<compile_context>
chip_gen: v7x
topology: tpu7x:2x2x1
jax: 0.10.0
libtpu: 0.0.40
codegen_flags: <defaults>
</compile_context>

<pallas_src>
import numpy as np
import jax
import jax.numpy as jnp
from jax import lax
from jax.experimental import pallas as pl
from jax.experimental.pallas import tpu as pltpu

POOLS = (2, 3, 5, 6)


# ----------------------------------------------------------------------------
# Pallas kernel: one batch element per grid step.
# ----------------------------------------------------------------------------
def spp_kernel(x_ref, w_ref, b_ref,
               uh0, uw0, uh1, uw1, uh2, uw2, uh3, uw3,
               o_ref):
    H, W, C = x_ref.shape
    Wout = o_ref.shape[-1]

    x = x_ref[...]                           # (H, W, C), lane = C
    w = w_ref[0]                             # (C,) 1x1-conv weight (hoisted)
    bias = b_ref[0]                          # SMEM scalar
    uh_refs = (uh0, uh1, uh2, uh3)
    uw_refs = (uw0, uw1, uw2, uw3)

    packed = jnp.zeros((H, Wout), jnp.float32)
    for idx, k in enumerate(POOLS):
        Hk, Wk = H // k, W // k
        L = (Wk - 1) * k + 1                 # sliding-window extent along W

        # --- H max-pool: regroup rows (leading-dim reshape, free) + max over k.
        hg = x[: Hk * k].reshape(Hk, k, W, C)
        t = hg[:, 0]
        for d in range(1, k):
            t = jnp.maximum(t, hg[:, d])     # (Hk, W, C)

        # --- W max-pool as a batched sliding max over contiguous shifted
        #     slices; the stride-k column selection is folded into uwT below.
        s = t[:, 0:L, :]
        for d in range(1, k):
            s = jnp.maximum(s, t[:, d:d + L, :])        # (Hk, L, C)

        # --- 1x1 conv: one weighted lane reduction over channels (+ bias;
        #     bilinear weights sum to 1, so the bias rides through the mixes).
        cs = jnp.sum(s * w, axis=-1) + bias             # (Hk, L)

        # --- Bilinear upsample on the MXU: column-select + W-mix, then H-mix.
        #     uwT is positioned so this pool lands in its own lane slot.
        m = jnp.dot(cs, uw_refs[idx][...],
                    preferred_element_type=jnp.float32)             # (Hk, Wout)
        packed = packed + jnp.dot(uh_refs[idx][...], m,
                                  preferred_element_type=jnp.float32)  # (H, Wout)

    o_ref[...] = packed                      # single unmasked lane-dense store


# ----------------------------------------------------------------------------
# Host-side helpers.
# ----------------------------------------------------------------------------
def _interp_matrix(out_size, in_size):
    """Bilinear interpolation weights matching F.interpolate(align_corners=False)."""
    i = np.arange(out_size, dtype=np.float64)
    src = np.maximum((i + 0.5) * (in_size / out_size) - 0.5, 0.0)
    lo = np.minimum(np.floor(src).astype(np.int64), in_size - 1)
    hi = np.minimum(lo + 1, in_size - 1)
    f = src - lo
    m = np.zeros((out_size, in_size), np.float64)
    m[np.arange(out_size), lo] += 1.0 - f
    m[np.arange(out_size), hi] += f
    return m.astype(np.float32)


def spp_block(x_nchw, conv_w, conv_b):
    """x_nchw: (B, C, H, W) f32. conv_w: (C,) 1x1-conv weight (out=1). conv_b: scalar."""
    x_nchw = x_nchw.astype(jnp.float32)
    B, C, H, W = x_nchw.shape
    Wout = ((4 * W + 127) // 128) * 128      # 4 layers packed along lanes

    # NCHW -> NHWC for lane-dense channel reduction; no channel padding.
    x_nhwc = jnp.transpose(x_nchw, (0, 2, 3, 1))
    w_vec = jnp.asarray(conv_w, jnp.float32).reshape(1, C)
    b_vec = jnp.asarray(conv_b, jnp.float32).reshape(1)

    mats, mat_specs = [], []
    for idx, k in enumerate(POOLS):
        Hk, Wk = H // k, W // k
        L = (Wk - 1) * k + 1
        uh = _interp_matrix(H, Hk)                       # (H, Hk)
        uw = _interp_matrix(W, Wk)                       # (W, Wk)
        # W-mix matrix with the stride-k selection folded in and the result
        # positioned in this pool's lane slot of the packed output.
        uwT = np.zeros((L, Wout), np.float32)
        uwT[::k, idx * W:(idx + 1) * W] = uw.T
        mats += [jnp.asarray(uh), jnp.asarray(uwT)]
        mat_specs += [pl.BlockSpec((H, Hk), lambda b: (0, 0)),
                      pl.BlockSpec((L, Wout), lambda b: (0, 0))]

    out = pl.pallas_call(
        spp_kernel,
        grid=(B,),
        out_shape=jax.ShapeDtypeStruct((B, H, Wout), jnp.float32),
        in_specs=[pl.BlockSpec((None, H, W, C), lambda b: (b, 0, 0, 0)),
                  pl.BlockSpec((1, C), lambda b: (0, 0)),
                  pl.BlockSpec(memory_space=pltpu.MemorySpace.SMEM),
                  *mat_specs],
        out_specs=pl.BlockSpec((None, H, Wout), lambda b: (b, 0, 0)),
        compiler_params=pltpu.CompilerParams(
            dimension_semantics=("parallel",)),
    )(x_nhwc, w_vec, b_vec, *mats)

    # Unpack the lane-packed layers and concatenate with the passthrough x.
    layers = out[:, :, :4 * W].reshape(B, H, 4, W).transpose(0, 2, 1, 3)
    return jnp.concatenate([layers, x_nchw], axis=1)     # (B, 4 + C, H, W)


# ----------------------------------------------------------------------------
# Plain-JAX reference (XLA ops) for a correctness check.
# ----------------------------------------------------------------------------
def _upsample_bilinear_ref(img, H, W):
    """img: (B, h, w) -> (B, H, W); PyTorch bilinear, align_corners=False."""
    _, h, w = img.shape

    def coords(out, inp):
        i = jnp.arange(out, dtype=jnp.float32)
        src = jnp.maximum((i + 0.5) * (inp / out) - 0.5, 0.0)
        lo = jnp.clip(jnp.floor(src).astype(jnp.int32), 0, inp - 1)
        hi = jnp.minimum(lo + 1, inp - 1)
        f = src - lo.astype(jnp.float32)
        return lo, hi, f

    r0, r1, fr = coords(H, h)
    c0, c1, fc = coords(W, w)
    top = img[:, r0, :][:, :, c0] * (1 - fc) + img[:, r0, :][:, :, c1] * fc
    bot = img[:, r1, :][:, :, c0] * (1 - fc) + img[:, r1, :][:, :, c1] * fc
    return top * (1 - fr)[None, :, None] + bot * fr[None, :, None]


def spp_reference(x_nchw, conv_w, conv_b):
    x = x_nchw.astype(jnp.float32)
    _, _, H, W = x.shape
    layers = []
    for k in POOLS:
        p = lax.reduce_window(x, -jnp.inf, lax.max,
                              (1, 1, k, k), (1, 1, k, k), 'VALID')
        conv = jnp.einsum('bchw,c->bhw', p, jnp.asarray(conv_w, jnp.float32)) + conv_b
        layers.append(_upsample_bilinear_ref(conv, H, W)[:, None])
    return jnp.concatenate(layers + [x], axis=1)


if __name__ == "__main__":
    B, C, H, W = 2, 4, 16, 16
    key = jax.random.PRNGKey(0)
    kx, kw, kb = jax.random.split(key, 3)

    x = jax.random.normal(kx, (B, C, H, W), jnp.float32)
    conv_w = jax.random.normal(kw, (C,), jnp.float32) * 0.5
    conv_b = float(jax.random.normal(kb, ())) * 0.1

    out = jax.block_until_ready(spp_block(x, conv_w, conv_b))
    ref = spp_reference(x, conv_w, conv_b)

    assert out.shape == (B, C + 4, H, W), out.shape
    # Tolerance covers the TPU default f32-matmul precision (bf16 MXU passes)
    # used for the two bilinear-mix matmuls; structural bugs would be O(1).
    err = float(jnp.max(jnp.abs(out - ref)))
    assert err < 5e-2, err
    print("KERNEL_OK")
</pallas_src>

<mosaic_0001>
module attributes {stable_mosaic.version = 11 : i64} {
  func.func @spp_kernel(%arg0: i32, %arg1: memref<1x16x16x4xf32, #tpu.memory_space<vmem>>, %arg2: memref<1x4xf32, #tpu.memory_space<vmem>>, %arg3: memref<1xf32, #tpu.memory_space<smem>>, %arg4: memref<16x8xf32, #tpu.memory_space<vmem>>, %arg5: memref<15x128xf32, #tpu.memory_space<vmem>>, %arg6: memref<16x5xf32, #tpu.memory_space<vmem>>, %arg7: memref<13x128xf32, #tpu.memory_space<vmem>>, %arg8: memref<16x3xf32, #tpu.memory_space<vmem>>, %arg9: memref<11x128xf32, #tpu.memory_space<vmem>>, %arg10: memref<16x2xf32, #tpu.memory_space<vmem>>, %arg11: memref<7x128xf32, #tpu.memory_space<vmem>>, %arg12: memref<1x16x128xf32, #tpu.memory_space<vmem>>) attributes {dimension_semantics = [#tpu.dimension_semantics<parallel>], iteration_bounds = array<i64: 2>, scalar_prefetch = 0 : i64, scratch_operands = 0 : i64, tpu.core_type = #tpu.core_type<tc>, window_params = [{transform_indices = @transform_0, window_bounds = array<i64: 1, 16, 16, 4>}, {pipeline_mode = #tpu.pipeline_mode<synchronous>, transform_indices = @transform_1, window_bounds = array<i64: 1, 4>}, {transform_indices = @transform_2, window_bounds = array<i64: 1>}, {pipeline_mode = #tpu.pipeline_mode<synchronous>, transform_indices = @transform_3, window_bounds = array<i64: 16, 8>}, {pipeline_mode = #tpu.pipeline_mode<synchronous>, transform_indices = @transform_4, window_bounds = array<i64: 15, 128>}, {pipeline_mode = #tpu.pipeline_mode<synchronous>, transform_indices = @transform_5, window_bounds = array<i64: 16, 5>}, {pipeline_mode = #tpu.pipeline_mode<synchronous>, transform_indices = @transform_6, window_bounds = array<i64: 13, 128>}, {pipeline_mode = #tpu.pipeline_mode<synchronous>, transform_indices = @transform_7, window_bounds = array<i64: 16, 3>}, {pipeline_mode = #tpu.pipeline_mode<synchronous>, transform_indices = @transform_8, window_bounds = array<i64: 11, 128>}, {pipeline_mode = #tpu.pipeline_mode<synchronous>, transform_indices = @transform_9, window_bounds = array<i64: 16, 2>}, {pipeline_mode = #tpu.pipeline_mode<synchronous>, transform_indices = @transform_10, window_bounds = array<i64: 7, 128>}, {transform_indices = @transform_11, window_bounds = array<i64: 1, 16, 128>}]} {
    %c0 = arith.constant 0 : index
    %c0_0 = arith.constant 0 : index
    %c0_1 = arith.constant 0 : index
    %c0_2 = arith.constant 0 : index
    %0 = vector.load %arg1[%c0, %c0_0, %c0_1, %c0_2] : memref<1x16x16x4xf32, #tpu.memory_space<vmem>>, vector<1x16x16x4xf32>
    %1 = vector.shape_cast %0 : vector<1x16x16x4xf32> to vector<16x16x4xf32>
    %c0_3 = arith.constant 0 : index
    %c0_4 = arith.constant 0 : index
    %2 = vector.load %arg2[%c0_3, %c0_4] : memref<1x4xf32, #tpu.memory_space<vmem>>, vector<1x4xf32>
    %3 = vector.shape_cast %2 : vector<1x4xf32> to vector<4xf32>
    %c0_5 = arith.constant 0 : index
    %4 = memref.load %arg3[%c0_5] : memref<1xf32, #tpu.memory_space<smem>>
    %cst = arith.constant 0.000000e+00 : f32
    %5 = vector.broadcast %cst : f32 to vector<16x128xf32>
    %6 = vector.shape_cast %1 : vector<16x16x4xf32> to vector<8x2x16x4xf32>
    %7 = vector.extract_strided_slice %6 {offsets = [0, 0, 0, 0], sizes = [8, 1, 16, 4], strides = [1, 1, 1, 1]} : vector<8x2x16x4xf32> to vector<8x1x16x4xf32>
    %8 = vector.shape_cast %7 : vector<8x1x16x4xf32> to vector<8x16x4xf32>
    %9 = vector.extract_strided_slice %6 {offsets = [0, 1, 0, 0], sizes = [8, 1, 16, 4], strides = [1, 1, 1, 1]} : vector<8x2x16x4xf32> to vector<8x1x16x4xf32>
    %10 = vector.shape_cast %9 : vector<8x1x16x4xf32> to vector<8x16x4xf32>
    %11 = arith.maximumf %8, %10 : vector<8x16x4xf32>
    %12 = vector.extract_strided_slice %11 {offsets = [0, 0, 0], sizes = [8, 15, 4], strides = [1, 1, 1]} : vector<8x16x4xf32> to vector<8x15x4xf32>
    %13 = vector.extract_strided_slice %11 {offsets = [0, 1, 0], sizes = [8, 15, 4], strides = [1, 1, 1]} : vector<8x16x4xf32> to vector<8x15x4xf32>
    %14 = arith.maximumf %12, %13 : vector<8x15x4xf32>
    %15 = vector.shape_cast %3 : vector<4xf32> to vector<1x1x4xf32>
    %16 = vector.broadcast %15 : vector<1x1x4xf32> to vector<8x15x4xf32>
    %17 = arith.mulf %14, %16 : vector<8x15x4xf32>
    %cst_6 = arith.constant dense<0.000000e+00> : vector<8x15xf32>
    %18 = vector.multi_reduction <add>, %17, %cst_6 [2] : vector<8x15x4xf32> to vector<8x15xf32>
    %19 = vector.broadcast %4 : f32 to vector<8x15xf32>
    %20 = arith.addf %18, %19 : vector<8x15xf32>
    %c0_7 = arith.constant 0 : index
    %c0_8 = arith.constant 0 : index
    %21 = vector.load %arg5[%c0_7, %c0_8] : memref<15x128xf32, #tpu.memory_space<vmem>>, vector<15x128xf32>
    %cst_9 = arith.constant dense<0.000000e+00> : vector<8x128xf32>
    %22 = tpu.matmul %20, %21, %cst_9 {dimension_numbers = #tpu.dot_dimension_numbers<[1], [0], [0], [1], [0, 0, 1, 1], [], []>} : vector<8x15xf32>, vector<15x128xf32>, vector<8x128xf32> -> vector<8x128xf32>
    %c0_10 = arith.constant 0 : index
    %c0_11 = arith.constant 0 : index
    %23 = vector.load %arg4[%c0_10, %c0_11] : memref<16x8xf32, #tpu.memory_space<vmem>>, vector<16x8xf32>
    %cst_12 = arith.constant dense<0.000000e+00> : vector<16x128xf32>
    %24 = tpu.matmul %23, %22, %cst_12 {dimension_numbers = #tpu.dot_dimension_numbers<[1], [0], [0], [1], [0, 0, 1, 1], [], []>} : vector<16x8xf32>, vector<8x128xf32>, vector<16x128xf32> -> vector<16x128xf32>
    %25 = arith.addf %5, %24 : vector<16x128xf32>
    %26 = vector.extract_strided_slice %1 {offsets = [0, 0, 0], sizes = [15, 16, 4], strides = [1, 1, 1]} : vector<16x16x4xf32> to vector<15x16x4xf32>
    %27 = vector.shape_cast %26 : vector<15x16x4xf32> to vector<5x3x16x4xf32>
    %28 = vector.extract_strided_slice %27 {offsets = [0, 0, 0, 0], sizes = [5, 1, 16, 4], strides = [1, 1, 1, 1]} : vector<5x3x16x4xf32> to vector<5x1x16x4xf32>
    %29 = vector.shape_cast %28 : vector<5x1x16x4xf32> to vector<5x16x4xf32>
    %30 = vector.extract_strided_slice %27 {offsets = [0, 1, 0, 0], sizes = [5, 1, 16, 4], strides = [1, 1, 1, 1]} : vector<5x3x16x4xf32> to vector<5x1x16x4xf32>
    %31 = vector.shape_cast %30 : vector<5x1x16x4xf32> to vector<5x16x4xf32>
    %32 = arith.maximumf %29, %31 : vector<5x16x4xf32>
    %33 = vector.extract_strided_slice %27 {offsets = [0, 2, 0, 0], sizes = [5, 1, 16, 4], strides = [1, 1, 1, 1]} : vector<5x3x16x4xf32> to vector<5x1x16x4xf32>
    %34 = vector.shape_cast %33 : vector<5x1x16x4xf32> to vector<5x16x4xf32>
    %35 = arith.maximumf %32, %34 : vector<5x16x4xf32>
    %36 = vector.extract_strided_slice %35 {offsets = [0, 0, 0], sizes = [5, 13, 4], strides = [1, 1, 1]} : vector<5x16x4xf32> to vector<5x13x4xf32>
    %37 = vector.extract_strided_slice %35 {offsets = [0, 1, 0], sizes = [5, 13, 4], strides = [1, 1, 1]} : vector<5x16x4xf32> to vector<5x13x4xf32>
    %38 = arith.maximumf %36, %37 : vector<5x13x4xf32>
    %39 = vector.extract_strided_slice %35 {offsets = [0, 2, 0], sizes = [5, 13, 4], strides = [1, 1, 1]} : vector<5x16x4xf32> to vector<5x13x4xf32>
    %40 = arith.maximumf %38, %39 : vector<5x13x4xf32>
    %41 = vector.shape_cast %3 : vector<4xf32> to vector<1x1x4xf32>
    %42 = vector.broadcast %41 : vector<1x1x4xf32> to vector<5x13x4xf32>
    %43 = arith.mulf %40, %42 : vector<5x13x4xf32>
    %cst_13 = arith.constant dense<0.000000e+00> : vector<5x13xf32>
    %44 = vector.multi_reduction <add>, %43, %cst_13 [2] : vector<5x13x4xf32> to vector<5x13xf32>
    %45 = vector.broadcast %4 : f32 to vector<5x13xf32>
    %46 = arith.addf %44, %45 : vector<5x13xf32>
    %c0_14 = arith.constant 0 : index
    %c0_15 = arith.constant 0 : index
    %47 = vector.load %arg7[%c0_14, %c0_15] : memref<13x128xf32, #tpu.memory_space<vmem>>, vector<13x128xf32>
    %cst_16 = arith.constant dense<0.000000e+00> : vector<5x128xf32>
    %48 = tpu.matmul %46, %47, %cst_16 {dimension_numbers = #tpu.dot_dimension_numbers<[1], [0], [0], [1], [0, 0, 1, 1], [], []>} : vector<5x13xf32>, vector<13x128xf32>, vector<5x128xf32> -> vector<5x128xf32>
    %c0_17 = arith.constant 0 : index
    %c0_18 = arith.constant 0 : index
    %49 = vector.load %arg6[%c0_17, %c0_18] : memref<16x5xf32, #tpu.memory_space<vmem>>, vector<16x5xf32>
    %cst_19 = arith.constant dense<0.000000e+00> : vector<16x128xf32>
    %50 = tpu.matmul %49, %48, %cst_19 {dimension_numbers = #tpu.dot_dimension_numbers<[1], [0], [0], [1], [0, 0, 1, 1], [], []>} : vector<16x5xf32>, vector<5x128xf32>, vector<16x128xf32> -> vector<16x128xf32>
    %51 = arith.addf %25, %50 : vector<16x128xf32>
    %52 = vector.extract_strided_slice %1 {offsets = [0, 0, 0], sizes = [15, 16, 4], strides = [1, 1, 1]} : vector<16x16x4xf32> to vector<15x16x4xf32>
    %53 = vector.shape_cast %52 : vector<15x16x4xf32> to vector<3x5x16x4xf32>
    %54 = vector.extract_strided_slice %53 {offsets = [0, 0, 0, 0], sizes = [3, 1, 16, 4], strides = [1, 1, 1, 1]} : vector<3x5x16x4xf32> to vector<3x1x16x4xf32>
    %55 = vector.shape_cast %54 : vector<3x1x16x4xf32> to vector<3x16x4xf32>
    %56 = vector.extract_strided_slice %53 {offsets = [0, 1, 0, 0], sizes = [3, 1, 16, 4], strides = [1, 1, 1, 1]} : vector<3x5x16x4xf32> to vector<3x1x16x4xf32>
    %57 = vector.shape_cast %56 : vector<3x1x16x4xf32> to vector<3x16x4xf32>
    %58 = arith.maximumf %55, %57 : vector<3x16x4xf32>
    %59 = vector.extract_strided_slice %53 {offsets = [0, 2, 0, 0], sizes = [3, 1, 16, 4], strides = [1, 1, 1, 1]} : vector<3x5x16x4xf32> to vector<3x1x16x4xf32>
    %60 = vector.shape_cast %59 : vector<3x1x16x4xf32> to vector<3x16x4xf32>
    %61 = arith.maximumf %58, %60 : vector<3x16x4xf32>
    %62 = vector.extract_strided_slice %53 {offsets = [0, 3, 0, 0], sizes = [3, 1, 16, 4], strides = [1, 1, 1, 1]} : vector<3x5x16x4xf32> to vector<3x1x16x4xf32>
    %63 = vector.shape_cast %62 : vector<3x1x16x4xf32> to vector<3x16x4xf32>
    %64 = arith.maximumf %61, %63 : vector<3x16x4xf32>
    %65 = vector.extract_strided_slice %53 {offsets = [0, 4, 0, 0], sizes = [3, 1, 16, 4], strides = [1, 1, 1, 1]} : vector<3x5x16x4xf32> to vector<3x1x16x4xf32>
    %66 = vector.shape_cast %65 : vector<3x1x16x4xf32> to vector<3x16x4xf32>
    %67 = arith.maximumf %64, %66 : vector<3x16x4xf32>
    %68 = vector.extract_strided_slice %67 {offsets = [0, 0, 0], sizes = [3, 11, 4], strides = [1, 1, 1]} : vector<3x16x4xf32> to vector<3x11x4xf32>
    %69 = vector.extract_strided_slice %67 {offsets = [0, 1, 0], sizes = [3, 11, 4], strides = [1, 1, 1]} : vector<3x16x4xf32> to vector<3x11x4xf32>
    %70 = arith.maximumf %68, %69 : vector<3x11x4xf32>
    %71 = vector.extract_strided_slice %67 {offsets = [0, 2, 0], sizes = [3, 11, 4], strides = [1, 1, 1]} : vector<3x16x4xf32> to vector<3x11x4xf32>
    %72 = arith.maximumf %70, %71 : vector<3x11x4xf32>
    %73 = vector.extract_strided_slice %67 {offsets = [0, 3, 0], sizes = [3, 11, 4], strides = [1, 1, 1]} : vector<3x16x4xf32> to vector<3x11x4xf32>
    %74 = arith.maximumf %72, %73 : vector<3x11x4xf32>
    %75 = vector.extract_strided_slice %67 {offsets = [0, 4, 0], sizes = [3, 11, 4], strides = [1, 1, 1]} : vector<3x16x4xf32> to vector<3x11x4xf32>
    %76 = arith.maximumf %74, %75 : vector<3x11x4xf32>
    %77 = vector.shape_cast %3 : vector<4xf32> to vector<1x1x4xf32>
    %78 = vector.broadcast %77 : vector<1x1x4xf32> to vector<3x11x4xf32>
    %79 = arith.mulf %76, %78 : vector<3x11x4xf32>
    %cst_20 = arith.constant dense<0.000000e+00> : vector<3x11xf32>
    %80 = vector.multi_reduction <add>, %79, %cst_20 [2] : vector<3x11x4xf32> to vector<3x11xf32>
    %81 = vector.broadcast %4 : f32 to vector<3x11xf32>
    %82 = arith.addf %80, %81 : vector<3x11xf32>
    %c0_21 = arith.constant 0 : index
    %c0_22 = arith.constant 0 : index
    %83 = vector.load %arg9[%c0_21, %c0_22] : memref<11x128xf32, #tpu.memory_space<vmem>>, vector<11x128xf32>
    %cst_23 = arith.constant dense<0.000000e+00> : vector<3x128xf32>
    %84 = tpu.matmul %82, %83, %cst_23 {dimension_numbers = #tpu.dot_dimension_numbers<[1], [0], [0], [1], [0, 0, 1, 1], [], []>} : vector<3x11xf32>, vector<11x128xf32>, vector<3x128xf32> -> vector<3x128xf32>
    %c0_24 = arith.constant 0 : index
    %c0_25 = arith.constant 0 : index
    %85 = vector.load %arg8[%c0_24, %c0_25] : memref<16x3xf32, #tpu.memory_space<vmem>>, vector<16x3xf32>
    %cst_26 = arith.constant dense<0.000000e+00> : vector<16x128xf32>
    %86 = tpu.matmul %85, %84, %cst_26 {dimension_numbers = #tpu.dot_dimension_numbers<[1], [0], [0], [1], [0, 0, 1, 1], [], []>} : vector<16x3xf32>, vector<3x128xf32>, vector<16x128xf32> -> vector<16x128xf32>
    %87 = arith.addf %51, %86 : vector<16x128xf32>
    %88 = vector.extract_strided_slice %1 {offsets = [0, 0, 0], sizes = [12, 16, 4], strides = [1, 1, 1]} : vector<16x16x4xf32> to vector<12x16x4xf32>
    %89 = vector.shape_cast %88 : vector<12x16x4xf32> to vector<2x6x16x4xf32>
    %90 = vector.extract_strided_slice %89 {offsets = [0, 0, 0, 0], sizes = [2, 1, 16, 4], strides = [1, 1, 1, 1]} : vector<2x6x16x4xf32> to vector<2x1x16x4xf32>
    %91 = vector.shape_cast %90 : vector<2x1x16x4xf32> to vector<2x16x4xf32>
    %92 = vector.extract_strided_slice %89 {offsets = [0, 1, 0, 0], sizes = [2, 1, 16, 4], strides = [1, 1, 1, 1]} : vector<2x6x16x4xf32> to vector<2x1x16x4xf32>
    %93 = vector.shape_cast %92 : vector<2x1x16x4xf32> to vector<2x16x4xf32>
    %94 = arith.maximumf %91, %93 : vector<2x16x4xf32>
    %95 = vector.extract_strided_slice %89 {offsets = [0, 2, 0, 0], sizes = [2, 1, 16, 4], strides = [1, 1, 1, 1]} : vector<2x6x16x4xf32> to vector<2x1x16x4xf32>
    %96 = vector.shape_cast %95 : vector<2x1x16x4xf32> to vector<2x16x4xf32>
    %97 = arith.maximumf %94, %96 : vector<2x16x4xf32>
    %98 = vector.extract_strided_slice %89 {offsets = [0, 3, 0, 0], sizes = [2, 1, 16, 4], strides = [1, 1, 1, 1]} : vector<2x6x16x4xf32> to vector<2x1x16x4xf32>
    %99 = vector.shape_cast %98 : vector<2x1x16x4xf32> to vector<2x16x4xf32>
    %100 = arith.maximumf %97, %99 : vector<2x16x4xf32>
    %101 = vector.extract_strided_slice %89 {offsets = [0, 4, 0, 0], sizes = [2, 1, 16, 4], strides = [1, 1, 1, 1]} : vector<2x6x16x4xf32> to vector<2x1x16x4xf32>
    %102 = vector.shape_cast %101 : vector<2x1x16x4xf32> to vector<2x16x4xf32>
    %103 = arith.maximumf %100, %102 : vector<2x16x4xf32>
    %104 = vector.extract_strided_slice %89 {offsets = [0, 5, 0, 0], sizes = [2, 1, 16, 4], strides = [1, 1, 1, 1]} : vector<2x6x16x4xf32> to vector<2x1x16x4xf32>
    %105 = vector.shape_cast %104 : vector<2x1x16x4xf32> to vector<2x16x4xf32>
    %106 = arith.maximumf %103, %105 : vector<2x16x4xf32>
    %107 = vector.extract_strided_slice %106 {offsets = [0, 0, 0], sizes = [2, 7, 4], strides = [1, 1, 1]} : vector<2x16x4xf32> to vector<2x7x4xf32>
    %108 = vector.extract_strided_slice %106 {offsets = [0, 1, 0], sizes = [2, 7, 4], strides = [1, 1, 1]} : vector<2x16x4xf32> to vector<2x7x4xf32>
    %109 = arith.maximumf %107, %108 : vector<2x7x4xf32>
    %110 = vector.extract_strided_slice %106 {offsets = [0, 2, 0], sizes = [2, 7, 4], strides = [1, 1, 1]} : vector<2x16x4xf32> to vector<2x7x4xf32>
    %111 = arith.maximumf %109, %110 : vector<2x7x4xf32>
    %112 = vector.extract_strided_slice %106 {offsets = [0, 3, 0], sizes = [2, 7, 4], strides = [1, 1, 1]} : vector<2x16x4xf32> to vector<2x7x4xf32>
    %113 = arith.maximumf %111, %112 : vector<2x7x4xf32>
    %114 = vector.extract_strided_slice %106 {offsets = [0, 4, 0], sizes = [2, 7, 4], strides = [1, 1, 1]} : vector<2x16x4xf32> to vector<2x7x4xf32>
    %115 = arith.maximumf %113, %114 : vector<2x7x4xf32>
    %116 = vector.extract_strided_slice %106 {offsets = [0, 5, 0], sizes = [2, 7, 4], strides = [1, 1, 1]} : vector<2x16x4xf32> to vector<2x7x4xf32>
    %117 = arith.maximumf %115, %116 : vector<2x7x4xf32>
    %118 = vector.shape_cast %3 : vector<4xf32> to vector<1x1x4xf32>
    %119 = vector.broadcast %118 : vector<1x1x4xf32> to vector<2x7x4xf32>
    %120 = arith.mulf %117, %119 : vector<2x7x4xf32>
    %cst_27 = arith.constant dense<0.000000e+00> : vector<2x7xf32>
    %121 = vector.multi_reduction <add>, %120, %cst_27 [2] : vector<2x7x4xf32> to vector<2x7xf32>
    %122 = vector.broadcast %4 : f32 to vector<2x7xf32>
    %123 = arith.addf %121, %122 : vector<2x7xf32>
    %c0_28 = arith.constant 0 : index
    %c0_29 = arith.constant 0 : index
    %124 = vector.load %arg11[%c0_28, %c0_29] : memref<7x128xf32, #tpu.memory_space<vmem>>, vector<7x128xf32>
    %cst_30 = arith.constant dense<0.000000e+00> : vector<2x128xf32>
    %125 = tpu.matmul %123, %124, %cst_30 {dimension_numbers = #tpu.dot_dimension_numbers<[1], [0], [0], [1], [0, 0, 1, 1], [], []>} : vector<2x7xf32>, vector<7x128xf32>, vector<2x128xf32> -> vector<2x128xf32>
    %c0_31 = arith.constant 0 : index
    %c0_32 = arith.constant 0 : index
    %126 = vector.load %arg10[%c0_31, %c0_32] : memref<16x2xf32, #tpu.memory_space<vmem>>, vector<16x2xf32>
    %cst_33 = arith.constant dense<0.000000e+00> : vector<16x128xf32>
    %127 = tpu.matmul %126, %125, %cst_33 {dimension_numbers = #tpu.dot_dimension_numbers<[1], [0], [0], [1], [0, 0, 1, 1], [], []>} : vector<16x2xf32>, vector<2x128xf32>, vector<16x128xf32> -> vector<16x128xf32>
    %128 = arith.addf %87, %127 : vector<16x128xf32>
    %c0_34 = arith.constant 0 : index
    %c0_35 = arith.constant 0 : index
    %c0_36 = arith.constant 0 : index
    %129 = vector.load %arg12[%c0_34, %c0_35, %c0_36] : memref<1x16x128xf32, #tpu.memory_space<vmem>>, vector<1x16x128xf32>
    %130 = vector.shape_cast %129 : vector<1x16x128xf32> to vector<16x128xf32>
    %131 = vector.shape_cast %128 : vector<16x128xf32> to vector<1x16x128xf32>
    tpu.vector_store %arg12[%c0_34, %c0_35, %c0_36], %131 {strides = array<i32>} : memref<1x16x128xf32, #tpu.memory_space<vmem>>, vector<1x16x128xf32>,
    return
  }
  func.func @transform_0(%arg0: i32) -> (i32, i32, i32, i32) {
    %c0_i32 = arith.constant 0 : i32
    %c0_i32_0 = arith.constant 0 : i32
    %c0_i32_1 = arith.constant 0 : i32
    %c0_i32_2 = arith.constant 0 : i32
    return %arg0, %c0_i32, %c0_i32_0, %c0_i32_1 : i32, i32, i32, i32
  }
  func.func @transform_1(%arg0: i32) -> (i32, i32) {
    %c0_i32 = arith.constant 0 : i32
    %c0_i32_0 = arith.constant 0 : i32
    %c0_i32_1 = arith.constant 0 : i32
    return %c0_i32, %c0_i32_0 : i32, i32
  }
  func.func @transform_2(%arg0: i32) -> i32 {
    %c0_i32 = arith.constant 0 : i32
    %c0_i32_0 = arith.constant 0 : i32
    return %c0_i32 : i32
  }
  func.func @transform_3(%arg0: i32) -> (i32, i32) {
    %c0_i32 = arith.constant 0 : i32
    %c0_i32_0 = arith.constant 0 : i32
    %c0_i32_1 = arith.constant 0 : i32
    return %c0_i32, %c0_i32_0 : i32, i32
  }
  func.func @transform_4(%arg0: i32) -> (i32, i32) {
    %c0_i32 = arith.constant 0 : i32
    %c0_i32_0 = arith.constant 0 : i32
    %c0_i32_1 = arith.constant 0 : i32
    return %c0_i32, %c0_i32_0 : i32, i32
  }
  func.func @transform_5(%arg0: i32) -> (i32, i32) {
    %c0_i32 = arith.constant 0 : i32
    %c0_i32_0 = arith.constant 0 : i32
    %c0_i32_1 = arith.constant 0 : i32
    return %c0_i32, %c0_i32_0 : i32, i32
  }
  func.func @transform_6(%arg0: i32) -> (i32, i32) {
    %c0_i32 = arith.constant 0 : i32
    %c0_i32_0 = arith.constant 0 : i32
    %c0_i32_1 = arith.constant 0 : i32
    return %c0_i32, %c0_i32_0 : i32, i32
  }
  func.func @transform_7(%arg0: i32) -> (i32, i32) {
    %c0_i32 = arith.constant 0 : i32
    %c0_i32_0 = arith.constant 0 : i32
    %c0_i32_1 = arith.constant 0 : i32
    return %c0_i32, %c0_i32_0 : i32, i32
  }
  func.func @transform_8(%arg0: i32) -> (i32, i32) {
    %c0_i32 = arith.constant 0 : i32
    %c0_i32_0 = arith.constant 0 : i32
    %c0_i32_1 = arith.constant 0 : i32
    return %c0_i32, %c0_i32_0 : i32, i32
  }
  func.func @transform_9(%arg0: i32) -> (i32, i32) {
    %c0_i32 = arith.constant 0 : i32
    %c0_i32_0 = arith.constant 0 : i32
    %c0_i32_1 = arith.constant 0 : i32
    return %c0_i32, %c0_i32_0 : i32, i32
  }
  func.func @transform_10(%arg0: i32) -> (i32, i32) {
    %c0_i32 = arith.constant 0 : i32
    %c0_i32_0 = arith.constant 0 : i32
    %c0_i32_1 = arith.constant 0 : i32
    return %c0_i32, %c0_i32_0 : i32, i32
  }
  func.func @transform_11(%arg0: i32) -> (i32, i32, i32) {
    %c0_i32 = arith.constant 0 : i32
    %c0_i32_0 = arith.constant 0 : i32
    %c0_i32_1 = arith.constant 0 : i32
    return %arg0, %c0_i32, %c0_i32_0 : i32, i32, i32
  }
}

</mosaic_0001>

<bundles_post_ra>
// kernel: tpu_custom_call.1
= control target key start
LH: loop header
LB: loop body
LE: loop exit
PB: predicated region body
PF: predicated region fallthrough
CT: control target
= control target key end

     0   :  { %s2816_s0 = inlined_call_operand.vmem [shape: f32[2,16,16,4], index: 0, kind: input, shape index: {}]   ;;  %s2817_s1 = inlined_call_operand.vmem [shape: f32[1,4], index: 1, kind: input, shape index: {}]   ;;  %s2818_s2 = inlined_call_operand.<no memory space> [shape: f32[1], index: 2, kind: input, shape index: {}]   ;;  %s2819_s3 = inlined_call_operand.vmem [shape: f32[16,8], index: 3, kind: input, shape index: {}]   ;;  %s2820_s4 = inlined_call_operand.vmem [shape: f32[15,128], index: 4, kind: input, shape index: {}]   ;;  %s2821_s5 = inlined_call_operand.vmem [shape: f32[16,5], index: 5, kind: input, shape index: {}]   ;;  %s2822_s6 = inlined_call_operand.vmem [shape: f32[13,128], index: 6, kind: input, shape index: {}]   ;;  %s2823_s7 = inlined_call_operand.vmem [shape: f32[16,3], index: 7, kind: input, shape index: {}]   ;;  %s2824_s8 = inlined_call_operand.vmem [shape: f32[11,128], index: 8, kind: input, shape index: {}]   ;;  %s2825_s9 = inlined_call_operand.vmem [shape: f32[16,2], index: 9, kind: input, shape index: {}]   ;;  %s2826_s10 = inlined_call_operand.vmem [shape: f32[7,128], index: 10, kind: input, shape index: {}]   ;;  %s2827_s11 = inlined_call_operand.hbm [shape: f32[2,16,128], index: 11, kind: output, shape index: {}]  }
   0x1   :  { %16 = sst [smem:[#allocation2]] %s2818_s2 }
   0x2   :  { %17 = vsyncpa [#allocation4], 0 }
   0x3   :  { %19 = vsyncpa [#allocation4 + $0x1], 0  ;;  %s2204_s19 = smov 0   ;;  %s2206_s20 = smov 0  }
   0x4   :  { %s2208_s21 = smov 0   ;;  %s2210_s22 = smov 0  }
   0x5 LB: > { %s2225_s2 = sadd.s32 4294967295, %s2132_s22   ;;  %s1904_s23 = sadd.s32 4294967294, %s2132_s22   ;;  %s2132_s22 = sphi %s2210_s22, %s2833_s22   ;;  %s2128_s21 = sphi %s2208_s21, %s2832_s21   ;;  %s2124_s20 = sphi %s2206_s20, %s2831_s20   ;;  %s2120_s19 = sphi %s2204_s19, %s2830_s19  }
   0x6   : > { %s2229_s24 = sadd.s32 1, %s2132_s22   ;;  %s268_s25 = sadd.s32 1, %s2128_s21 }
   0x7   : > { %s265_s26 = ssub.s32 %s2132_s22, %s2229_s24  ;;  %p278_p0 = scmp.ne.s32.totalorder %s2128_s21, %s2124_s20 }
   0x8   : > { %p266_p1 = scmp.eq.s32.totalorder %s265_s26, 0  ;;  %p279_p2 = scmp.eq.s32.totalorder %s2225_s2, 1 }
   0x9   : > { %p284_p3 = scmp.ne.s32.totalorder %s2124_s20, %s2120_s19  ;;  %p285_p4 = scmp.eq.s32.totalorder %s1904_s23, 1 }
   0xa   : > { %s2240_s27 = scalar_select %p266_p1, %s2128_s21, %s268_s25  }
   0xb   : > { %p2242_p5 = por %p279_p2, %p278_p0  ;;  %p2246_p6 = por %p285_p4, %p284_p3 }
   0xc   : > { %p1907_p7 = scmp.ge.s32.totalorder %s2132_s22, 1  ;;  %p341_p8 = scmp.lt.s32.totalorder %s2132_s22, 3 }
   0xe   : > { %p342_p9 = pnand %p1907_p7, %p341_p8 }
   0xf   : > { %p381_p10 = scmp.lt.s32.totalorder (!%p342_p9), %s2225_s2, 1  ;;  %vm535_vm0 = vcmask (!%p342_p9), 30720   ;;  %vm452_vm1 = vcmask (!%p342_p9), 1046528   ;;  %vm531_vm2 = vcmask (!%p342_p9), 31744   ;;  %v2295_v19 = vld [vmem:[%s2817_s1] ss:$0 sm:$0xff] (!%p342_p9) }
  0x10   : > { %345 = sbr.rel (%p342_p9) target bundleno = 705 (0x2c1), region = 64  ;;  %vm843_vm3 = vcmask (!%p342_p9), 1045504   ;;  %vm892_vm4 = vcmask (!%p342_p9), 28672   ;;  %vm994_vm5 = vcmask (!%p342_p9), 1044480   ;;  %vm1324_vm6 = vcmask (!%p342_p9), 1043456   ;;  %s378_s16 = sand.u32 (!%p342_p9), 1, %s2124_s20  }
  0x11   : > { %vm1355_vm7 = vcmask (!%p342_p9), 26624   ;;  %vm1417_vm8 = vcmask (!%p342_p9), 1042432   ;;  %vm2135_vm9 = vmmov (!%p342_p9), 1   ;;  %vm2136_vm11 = vmmov (!%p342_p9), 0   ;;  %s1908_s17 = sshll.u32 (!%p342_p9), %s378_s16, 4  ;;  %s1937_s25 = sshll.u32 (!%p342_p9), %s2225_s2, 8 }
  0x12   : > { %vm2009_vm10 = vmpackc.low (!%p342_p9), %vm452_vm1, %vm2135_vm9  ;;  %vm627_vm12 = vcmask (!%p342_p9), 130112   ;;  %vm692_vm13 = vcmask (!%p342_p9), 1041409   ;;  %vm694_vm14 = vcmask (!%p342_p9), 1042434   ;;  %vm696_vm15 = vcmask (!%p342_p9), 1043459   ;;  %s380_s18 = scalar_lea.vmem (!%p342_p9), [#allocation3], %s1908_s17  ;;  %s2775_s13 = scalar_lea.sflag (!%p342_p9), [#allocation4], %s378_s16 }
  0x13   : > { %s1842_s23 = sshll.u32 (!%p342_p9), %s380_s18, 4  ;;  %s2768_s23 = int_to_ptr.vmem [resolvable:$true] %s1842_s23 }
  0x14   : > { %s2070_s14 = scalar_lea.vmem (!%p342_p9), %s2768_s23, 256 }
  0x15   : > { %p2071_p11 = scmp.ne.s32.totalorder (!%p342_p9), %s2768_s23, %s2070_s14 }
  0x17   : > { %s382_s30 = scalar_select %p381_p10, %s2225_s2, 1 }
  0x18   : > { %p2072_p12 = pnand %p2071_p11, %p2242_p5  ;;  %s2138_s2 = smov [#allocation3]  }
  0x19   : > { %s1936_s12 = sshll.u32 %s382_s30, 8  ;;  %s419_s30 = sld [smem:[#allocation2]] }
  0x1a   : > { %s2257_s15 = scalar_lea.vmem %s2816_s0, %s1936_s12  ;;  %s2773_s12 = scalar_lea.hbm %s2827_s11, %s1937_s25 }
  0x1b   : > { %v391_v0 = vld [vmem:[%s2257_s15 + $0x28] sm:$0xff]  ;;  %v2261_v1 = vld [vmem:[%s2257_s15 + $0x38] sm:$0xff]  ;;  %v386_v9 = vld [vmem:[%s2257_s15] sm:$0xff]  ;;  %p2073_p13 = pneg %p2072_p12 }
  0x1c   : > { %v387_v2 = vld [vmem:[%s2257_s15 + $0x8] sm:$0xff]  ;;  %v2265_v3 = vmax.f32 %v391_v0, %v2261_v1  ;;  %v389_v4 = vld [vmem:[%s2257_s15 + $0x18] sm:$0xff]  ;;  %v388_v10 = vld [vmem:[%s2257_s15 + $0x10] sm:$0xff] }
  0x1d   : > { %v2269_v5 = vld [vmem:[%s2257_s15 + $0x48] sm:$0xff]  ;;  %v2272_v6 = vld [vmem:[%s2257_s15 + $0x58] sm:$0xff]  ;;  %v421_v7 = vmax.f32 %v387_v2, %v389_v4  ;;  %v2282_v14 = vmax.f32 %v386_v9, %v388_v10  ;;  %v2287_v17 = vld [vmem:[%s2257_s15 + $0x40] sm:$0xff] }
  0x1e   : > { %v425_v8 = vmax.f32 %v2269_v5, %v2272_v6  ;;  %v399_v11 = vld [vmem:[%s2257_s15 + $0x68] sm:$0xff]  ;;  %v457_v12 = vrot.slane %v2265_v3, 1  ;;  %v785_v13 = vmax.f32 %v2261_v1, %v2269_v5  ;;  %v401_v15 = vld [vmem:[%s2257_s15 + $0x78] sm:$0xff]  ;;  %v2290_v18 = vld [vmem:[%s2257_s15 + $0x50] sm:$0xff] }
  0x1f   : > { %v1238_v16 = vmax.f32 %v2272_v6, %v399_v11  ;;  %v2297_v20 = vmax.f32 %v421_v7, %v391_v0  ;;  %v454_v21 = vrot.slane %v421_v7, 1  ;;  %v427_v23 = vmax.f32 %v399_v11, %v401_v15  ;;  %v403_v24 = vld [vmem:[%s2257_s15 + $0x88] sm:$0xff]  ;;  %v2301_v25 = vld [vmem:[%s2257_s15 + $0x98] sm:$0xff]  ;;  %v398_v46 = vld [vmem:[%s2257_s15 + $0x60] sm:$0xff] }
  0x20   : > { %v460_v22 = vrot.slane %v425_v8, 1  ;;  %v496_v26 = vmax.f32 %v2265_v3, %v457_v12  ;;  %v453_v27 = vrot.slane %v2282_v14, 1  ;;  %v424_v29 = vmax.f32 %v2287_v17, %v2290_v18  ;;  %v400_v47 = vld [vmem:[%s2257_s15 + $0x70] sm:$0xff]  ;;  %v390_v56 = vld [vmem:[%s2257_s15 + $0x20] sm:$0xff]  ;;  %v411_v3 = vld [vmem:[%s2257_s15 + $0xc8] sm:$0xff] }
  0x21   : > { %v1240_v28 = vmax.f32 %v1238_v16, %v401_v15  ;;  %v1244_v30 = vmax.f32 %v2297_v20, %v2261_v1  ;;  %v494_v31 = vmax.f32 %v421_v7, %v454_v21  ;;  %v463_v33 = vrot.slane %v427_v23, 1  ;;  %v2340_v57 = vld [vmem:[%s2257_s15 + $0x30] sm:$0xff]  ;;  %v402_v4 = vld [vmem:[%s2257_s15 + $0x80] sm:$0xff]  ;;  %v2358_v15 = vld [vmem:[%s2257_s15 + $0xa8] sm:$0xff] }
  0x22   : > { %v498_v32 = vmax.f32 %v425_v8, %v460_v22  ;;  %v518_v34 = vmul.f32 %v2295_v19, %v496_v26  ;;  %v455_v35 = vsel %vm452_vm1, %v453_v27, %v454_v21  ;;  %v459_v36 = vrot.slane %v424_v29, 1  ;;  %v2351_v7 = vld [vmem:[%s2257_s15 + $0x90] sm:$0xff]  ;;  %v2361_v16 = vld [vmem:[%s2257_s15 + $0xb8] sm:$0xff] }
  0x23   : > { %v2314_v37 = vmax.f32 %v403_v24, %v2301_v25  ;;  %v516_v38 = vmul.f32 %v2295_v19, %v494_v31  ;;  %v2319_v40 = vmax.f32 %v1244_v30, %v2269_v5  ;;  %v493_v41 = vmax.f32 %v2282_v14, %v455_v35  ;;  %v2379_v35 = vld [vmem:[%s2257_s15 + $0xa0] sm:$0xff] }
  0x24   : > { %v520_v39 = vmul.f32 %v2295_v19, %v498_v32  ;;  %v542_v42 = vsel %vm535_vm0, %v518_v34, 0.0  ;;  %v500_v43 = vmax.f32 %v427_v23, %v463_v33  ;;  %v461_v44 = vsel %vm452_vm1, %v459_v36, %v460_v22 }
  0x25   : > { %v466_v45 = vrot.slane %v2314_v37, 1  ;;  %543 = vadd.xlane.f32.xlu1 %v542_v42  ;;  %v536_v48 = vsel %vm535_vm0, %v516_v38, 0.0  ;;  %v2331_v50 = vmax.f32 %v2319_v40, %v2272_v6  ;;  %v515_v51 = vmul.f32 %v2295_v19, %v493_v41 }
  0x26   : > { %v548_v49 = vsel %vm535_vm0, %v520_v39, 0.0  ;;  %537 = vadd.xlane.f32.xlu0 %v536_v48  ;;  %v522_v52 = vmul.f32 %v2295_v19, %v500_v43  ;;  %v497_v53 = vmax.f32 %v424_v29, %v461_v44  ;;  %v2336_v55 = vmax.f32 %v427_v23, %v403_v24  ;;  %v413_v44 = vld [vmem:[%s2257_s15 + $0xd8] sm:$0xff] }
  0x27   : > { %v502_v54 = vmax.f32 %v2314_v37, %v466_v45  ;;  %v532_v58 = vsel %vm531_vm2, %v515_v51, 0.0  ;;  %v1246_v59 = vmax.f32 %v1240_v28, %v403_v24  ;;  %v426_v60 = vmax.f32 %v398_v46, %v400_v47  ;;  %v412_v51 = vld [vmem:[%s2257_s15 + $0xd0] sm:$0xff] }
  0x28   : > { %v1237_v61 = vmax.f32 %v2290_v18, %v398_v46  ;;  %v554_v62 = vsel %vm535_vm0, %v522_v52, 0.0  ;;  %v519_v63 = vmul.f32 %v2295_v19, %v497_v53  ;;  %v1581_v2 = vmax.f32 %v2336_v55, %v2301_v25 }
  0x29   : > { %v524_v0 = vmul.f32 %v2295_v19, %v502_v54  ;;  %549 = vadd.xlane.f32.xlu1 %v548_v49  ;;  %v2354_v8 = vmax.f32 %v1246_v59, %v2301_v25  ;;  %v462_v9 = vrot.slane %v426_v60, 1  ;;  %v422_v11 = vmax.f32 %v390_v56, %v2340_v57  ;;  %v410_v49 = vld [vmem:[%s2257_s15 + $0xc0] sm:$0xff] }
  0x2a   : > { %v1239_v10 = vmax.f32 %v1237_v61, %v400_v47  ;;  %533 = vadd.xlane.f32.xlu0 %v532_v58  ;;  %v545_v21 = vsel %vm531_vm2, %v519_v63, 0.0  ;;  %v784_v23 = vmax.f32 %v2340_v57, %v2287_v17  ;;  %v2368_v24 = vmax.f32 %v2282_v14, %v390_v56  ;;  %v2382_v14 = vld [vmem:[%s2257_s15 + $0xb0] sm:$0xff] }
  0x2b   : > { %v560_v22 = vsel %vm535_vm0, %v524_v0, 0.0  ;;  %v464_v26 = vsel %vm452_vm1, %v462_v9, %v463_v33  ;;  %v456_v27 = vrot.slane %v422_v11, 1  ;;  %v428_v28 = vmax.f32 %v402_v4, %v2351_v7 }
  0x2c   : > { %v2372_v29 = vmax.f32 %v426_v60, %v402_v4  ;;  %v499_v30 = vmax.f32 %v426_v60, %v464_v26  ;;  %v1243_v31 = vmax.f32 %v2368_v24, %v2340_v57  ;;  %v1245_v32 = vmax.f32 %v1239_v10, %v402_v4  ;;  %v417_v4 = vld [vmem:[%s2257_s15 + $0xf8] sm:$0xff]  ;;  %v416_v26 = vld [vmem:[%s2257_s15 + $0xf0] sm:$0xff] }
  0x2d   : > { %v431_v34 = vmax.f32 %v2358_v15, %v2361_v16  ;;  %555 = vadd.xlane.f32.xlu1 %v554_v62  ;;  %v458_v33 = vsel %vm452_vm1, %v456_v27, %v457_v12  ;;  %v465_v36 = vrot.slane %v428_v28, 1  ;;  %v1583_v38 = vmax.f32 %v1581_v2, %v2358_v15  ;;  %v2420_v2 = vld [vmem:[%s2257_s15 + $0xe8] sm:$0xff] }
  0x2e   : > { %v1580_v37 = vmax.f32 %v2372_v29, %v2351_v7  ;;  %546 = vadd.xlane.f32.xlu0 %v545_v21  ;;  %v521_v39 = vmul.f32 %v2295_v19, %v499_v30  ;;  %v495_v41 = vmax.f32 %v422_v11, %v458_v33  ;;  %v2392_v42 = vmax.f32 %v1243_v31, %v2287_v17 }
  0x2f   : > { %v2395_v43 = vmax.f32 %v1245_v32, %v2351_v7  ;;  %v467_v12 = vsel %vm452_vm1, %v465_v36, %v466_v45  ;;  %v469_v46 = vrot.slane %v431_v34, 1  ;;  %v2401_v47 = vmax.f32 %v1583_v38, %v2361_v16 }
  0x30   : > { %v430_v48 = vmax.f32 %v2379_v35, %v2382_v14  ;;  %v551_v52 = vsel %vm531_vm2, %v521_v39, 0.0  ;;  %v517_v53 = vmul.f32 %v2295_v19, %v495_v41  ;;  %v501_v54 = vmax.f32 %v428_v28, %v467_v12 }
  0x31   : > { %v1582_v56 = vmax.f32 %v1580_v37, %v2379_v35  ;;  %561 = vadd.xlane.f32.xlu1 %v560_v22  ;;  %v504_v45 = vmax.f32 %v431_v34, %v469_v46  ;;  %v2410_v59 = vmax.f32 %v411_v3, %v413_v44  ;;  %v1242_v60 = vmax.f32 %v431_v34, %v411_v3  ;;  %v2427_v22 = vld [vmem:[%s2257_s15 + $0xe0] sm:$0xff]  ;;  %s2074_s15 = sshll.u32 %s2138_s2, 4  ;;  %s2075_s15 = int_to_ptr.vmem [resolvable:$false] %s2074_s15 }
  0x32   : > { %v468_v58 = vrot.slane %v430_v48, 1  ;;  %552 = vadd.xlane.f32.xlu0 %v551_v52  ;;  %v539_v61 = vsel %vm531_vm2, %v517_v53, 0.0  ;;  %v523_v62 = vmul.f32 %v2295_v19, %v501_v54  ;;  %v2417_v0 = vmax.f32 %v410_v49, %v412_v51  ;;  %s2076_s17 = scalar_lea.vmem %s2075_s15, 512  ;;  %p2077_p0 = scmp.lt.s32.totalorder %s2768_s23, %s2075_s15 }
  0x33   : > { %v2415_v63 = vmax.f32 %v1582_v56, %v2382_v14  ;;  %v526_v9 = vmul.f32 %v2295_v19, %v504_v45  ;;  %v472_v11 = vrot.slane %v2410_v59, 1  ;;  %v1248_v21 = vmax.f32 %v1242_v60, %v413_v44  ;;  %p2078_p1 = scmp.lt.s32.totalorder %s2076_s17, %s2070_s14 }
  0x34   : > { %v470_v10 = vsel %vm452_vm1, %v468_v58, %v469_v46  ;;  %v557_v27 = vsel %vm531_vm2, %v523_v62, 0.0  ;;  %v471_v30 = vrot.slane %v2417_v0, 1  ;;  %v1241_v31 = vmax.f32 %v430_v48, %v410_v49 }
  0x35   : > { %v503_v28 = vmax.f32 %v430_v48, %v470_v10  ;;  %540 = vadd.xlane.f32.xlu1 %v539_v61  ;;  %v566_v32 = vsel %vm535_vm0, %v526_v9, 0.0  ;;  %v506_v34 = vmax.f32 %v2410_v59, %v472_v11  ;;  %v435_v33 = vmax.f32 %v2420_v2, %v417_v4  ;;  %p2079_p2 = por %p2078_p1, %p2077_p0 }
  0x36   : > { %v2436_v36 = vmax.f32 %v1248_v21, %v2420_v2  ;;  %558 = vadd.xlane.f32.xlu0 %v557_v27  ;;  %v473_v38 = vsel %vm452_vm1, %v471_v30, %v472_v11  ;;  %v1247_v39 = vmax.f32 %v1241_v31, %v412_v51  ;;  %v434_v41 = vmax.f32 %v2427_v22, %v416_v26 }
  0x37   : > { %v525_v37 = vmul.f32 %v2295_v19, %v503_v28  ;;  %v528_v3 = vmul.f32 %v2295_v19, %v506_v34  ;;  %v505_v44 = vmax.f32 %v2417_v0, %v473_v38  ;;  %v475_v12 = vrot.slane %v435_v33, 1  ;;  %p2080_p3 = pnand %p2079_p2, %p2073_p13 }
  0x38   : > { %v809_v46 = vrot.slane %v2297_v20, 1  ;;  %v474_v49 = vrot.slane %v434_v41, 1  ;;  %v2446_v52 = vmax.f32 %v1247_v39, %v2427_v22  ;;  %v845_v53 = vrot.slane %v2297_v20, 2 }
  0x39   : > { %v563_v48 = vsel %vm531_vm2, %v525_v37, 0.0  ;;  %567 = vadd.xlane.f32.xlu1 %v566_v32  ;;  %v572_v51 = vsel %vm535_vm0, %v528_v3, 0.0  ;;  %v527_v54 = vmul.f32 %v2295_v19, %v505_v44  ;;  %v508_v56 = vmax.f32 %v435_v33, %v475_v12 }
  0x3a   : > { %v834_v45 = vmax.f32 %v2297_v20, %v809_v46  ;;  %564 = vadd.xlane.f32.xlu0 %v563_v48  ;;  %v476_v58 = vsel %vm452_vm1, %v474_v49, %v475_v12  ;;  %v808_v60 = vrot.slane %v2368_v24, 1  ;;  %v844_v61 = vrot.slane %v2368_v24, 2 }
  0x3b   : > { %v791_v62 = vmax.f32 %v785_v13, %v2272_v6  ;;  %v569_v4 = vsel %vm531_vm2, %v527_v54, 0.0  ;;  %v530_v9 = vmul.f32 %v2295_v19, %v508_v56  ;;  %v507_v10 = vmax.f32 %v434_v41, %v476_v58 }
  0x3c   : > { %v870_v11 = vmax.f32 %v834_v45, %v845_v53  ;;  %v810_v20 = vsel %vm452_vm1, %v808_v60, %v809_v46  ;;  %v846_v21 = vsel %vm843_vm3, %v844_v61, %v845_v53  ;;  %v790_v13 = vmax.f32 %v784_v23, %v2290_v18 }
  0x3d   : > { %v812_v26 = vrot.slane %v791_v62, 1  ;;  %v848_v27 = vrot.slane %v791_v62, 2  ;;  %573 = vadd.xlane.f32.xlu1 %v572_v51  ;;  %v578_v28 = vsel %vm535_vm0, %v530_v9, 0.0  ;;  %v529_v30 = vmul.f32 %v2295_v19, %v507_v10 }
  0x3e   : > { %v880_v1 = vmul.f32 %v2295_v19, %v870_v11  ;;  %v833_v5 = vmax.f32 %v2368_v24, %v810_v20  ;;  %570 = vadd.xlane.f32.xlu0 %v569_v4  ;;  %v815_v31 = vrot.slane %v2336_v55, 1  ;;  %v851_v32 = vrot.slane %v2336_v55, 2 }
  0x3f   : > { %v836_v6 = vmax.f32 %v791_v62, %v812_v26  ;;  %v575_v34 = vsel %vm531_vm2, %v529_v30, 0.0  ;;  %v814_v38 = vrot.slane %v2372_v29, 1  ;;  %v811_v24 = vrot.slane %v790_v13, 1 }
  0x40   : > { %v893_v33 = vsel %vm892_vm4, %v880_v1, 0.0  ;;  %v869_v37 = vmax.f32 %v833_v5, %v846_v21  ;;  %v847_v41 = vrot.slane %v790_v13, 2  ;;  %v838_v3 = vmax.f32 %v2336_v55, %v815_v31 }
  0x41   : > { %v872_v39 = vmax.f32 %v836_v6, %v848_v27  ;;  %579 = vadd.xlane.f32.xlu1 %v578_v28  ;;  %v816_v57 = vsel %vm452_vm1, %v814_v38, %v815_v31  ;;  %v850_v23 = vrot.slane %v2372_v29, 2  ;;  %v787_v44 = vmax.f32 %v2301_v25, %v2358_v15 }
  0x42   : > { %v879_v17 = vmul.f32 %v2295_v19, %v869_v37  ;;  %576 = vadd.xlane.f32.xlu0 %v575_v34  ;;  %v813_v46 = vsel %vm452_vm1, %v811_v24, %v812_v26  ;;  %v849_v48 = vsel %vm843_vm3, %v847_v41, %v848_v27  ;;  %v874_v49 = vmax.f32 %v838_v3, %v851_v32 }
  0x43   : > { %v882_v12 = vmul.f32 %v2295_v19, %v872_v39  ;;  %v835_v53 = vmax.f32 %v790_v13, %v813_v46  ;;  %v837_v51 = vmax.f32 %v2372_v29, %v816_v57  ;;  %v852_v54 = vsel %vm843_vm3, %v850_v23, %v851_v32 }
  0x44   : > { %v889_v55 = vsel %vm531_vm2, %v879_v17, 0.0  ;;  %v884_v45 = vmul.f32 %v2295_v19, %v874_v49  ;;  %v795_v25 = vmax.f32 %v787_v44, %v2361_v16  ;;  %v786_v15 = vmax.f32 %v2351_v7, %v2379_v35 }
  0x45   : > { %v899_v56 = vsel %vm892_vm4, %v882_v12, 0.0  ;;  %894 = vadd.xlane.f32.xlu1 %v893_v33  ;;  %v871_v58 = vmax.f32 %v835_v53, %v849_v48  ;;  %v873_v60 = vmax.f32 %v837_v51, %v852_v54  ;;  %v797_v61 = vmax.f32 %v2410_v59, %v2420_v2 }
  0x46   : > { %v796_v29 = vmax.f32 %v2417_v0, %v2427_v22  ;;  %890 = vadd.xlane.f32.xlu0 %v889_v55  ;;  %v905_v62 = vsel %vm892_vm4, %v884_v45, 0.0  ;;  %v818_v4 = vrot.slane %v795_v25, 1  ;;  %v854_v9 = vrot.slane %v795_v25, 2 }
  0x47   : > { %v794_v10 = vmax.f32 %v786_v15, %v2382_v14  ;;  %v881_v16 = vmul.f32 %v2295_v19, %v871_v58  ;;  %v883_v7 = vmul.f32 %v2295_v19, %v873_v60  ;;  %v821_v35 = vrot.slane %v797_v61, 1 }
  0x48   : > { %v857_v11 = vrot.slane %v797_v61, 2  ;;  %v840_v20 = vmax.f32 %v795_v25, %v818_v4  ;;  %v820_v21 = vrot.slane %v796_v29, 1  ;;  %v856_v27 = vrot.slane %v796_v29, 2 }
  0x49   : > { %v817_v59 = vrot.slane %v794_v10, 1  ;;  %v853_v2 = vrot.slane %v794_v10, 2  ;;  %900 = vadd.xlane.f32.xlu1 %v899_v56  ;;  %v896_v0 = vsel %vm531_vm2, %v881_v16, 0.0  ;;  %v902_v22 = vsel %vm531_vm2, %v883_v7, 0.0 }
  0x4a   : > { %v842_v26 = vmax.f32 %v797_v61, %v821_v35  ;;  %897 = vadd.xlane.f32.xlu0 %v896_v0  ;;  %v876_v14 = vmax.f32 %v840_v20, %v854_v9  ;;  %v822_v1 = vsel %vm452_vm1, %v820_v21, %v821_v35  ;;  %v858_v31 = vsel %vm843_vm3, %v856_v27, %v857_v11 }
  0x4b   : > { %v819_v28 = vsel %vm452_vm1, %v817_v59, %v818_v4  ;;  %v855_v30 = vsel %vm843_vm3, %v853_v2, %v854_v9  ;;  %v841_v13 = vmax.f32 %v796_v29, %v822_v1  ;;  %v1262_v34 = vrot.slane %v2319_v40, 1 }
  0x4c   : > { %v839_v5 = vmax.f32 %v794_v10, %v819_v28  ;;  %v878_v6 = vmax.f32 %v842_v26, %v857_v11  ;;  %v886_v32 = vmul.f32 %v2295_v19, %v876_v14  ;;  %v1283_v33 = vrot.slane %v2319_v40, 2 }
  0x4d   : > { %v1304_v37 = vrot.slane %v2319_v40, 3  ;;  %906 = vadd.xlane.f32.xlu1 %v905_v62  ;;  %v877_v24 = vmax.f32 %v841_v13, %v858_v31  ;;  %v1326_v41 = vrot.slane %v2319_v40, 4  ;;  %v1277_v17 = vmax.f32 %v2319_v40, %v1262_v34 }
  0x4e   : > { %v875_v38 = vmax.f32 %v839_v5, %v855_v30  ;;  %v888_v39 = vmul.f32 %v2295_v19, %v878_v6  ;;  %903 = vadd.xlane.f32.xlu0 %v902_v22  ;;  %v911_v3 = vsel %vm892_vm4, %v886_v32, 0.0  ;;  %v1261_v57 = vrot.slane %v2392_v42, 1 }
  0x4f   : > { %v1282_v23 = vrot.slane %v2392_v42, 2  ;;  %v887_v46 = vmul.f32 %v2295_v19, %v877_v24  ;;  %v1303_v48 = vrot.slane %v2392_v42, 3  ;;  %v1298_v49 = vmax.f32 %v1277_v17, %v1283_v33 }
  0x50   : > { %v885_v44 = vmul.f32 %v2295_v19, %v875_v38  ;;  %v917_v12 = vsel %vm892_vm4, %v888_v39, 0.0  ;;  %v1263_v55 = vsel %vm452_vm1, %v1261_v57, %v1262_v34  ;;  %v1325_v51 = vrot.slane %v2392_v42, 4 }
  0x51   : > { %v1284_v53 = vsel %vm843_vm3, %v1282_v23, %v1283_v33  ;;  %912 = vadd.xlane.f32.xlu1 %v911_v3  ;;  %v914_v54 = vsel %vm531_vm2, %v887_v46, 0.0  ;;  %v1276_v56 = vmax.f32 %v2392_v42, %v1263_v55  ;;  %v1305_v45 = vsel %vm994_vm5, %v1303_v48, %v1304_v37 }
  0x52   : > { %v908_v40 = vsel %vm531_vm2, %v885_v44, 0.0  ;;  %v1319_v25 = vmax.f32 %v1298_v49, %v1304_v37  ;;  %v1327_v15 = vsel %vm1324_vm6, %v1325_v51, %v1326_v41  ;;  %v1265_v58 = vrot.slane %v2354_v8, 1 }
  0x53   : > { %909 = vadd.xlane.f32.xlu0 %v908_v40  ;;  %v1286_v60 = vrot.slane %v2354_v8, 2  ;;  %v1297_v61 = vmax.f32 %v1276_v56, %v1284_v53  ;;  %v1307_v29 = vrot.slane %v2354_v8, 3  ;;  %v1329_v62 = vrot.slane %v2354_v8, 4 }
  0x54   : > { %v1264_v4 = vrot.slane %v2395_v43, 1  ;;  %v1341_v9 = vmax.f32 %v1319_v25, %v1326_v41  ;;  %v1279_v10 = vmax.f32 %v2354_v8, %v1265_v58  ;;  %v1285_v16 = vrot.slane %v2395_v43, 2 }
  0x55   : > { %v1306_v7 = vrot.slane %v2395_v43, 3  ;;  %918 = vadd.xlane.f32.xlu1 %v917_v12  ;;  %v1318_v35 = vmax.f32 %v1297_v61, %v1305_v45  ;;  %v1328_v20 = vrot.slane %v2395_v43, 4  ;;  %v1268_v59 = vrot.slane %v2436_v36, 1 }
  0x56   : > { %v1266_v11 = vsel %vm452_vm1, %v1264_v4, %v1265_v58  ;;  %v1347_v2 = vmul.f32 %v2295_v19, %v1341_v9  ;;  %v1300_v21 = vmax.f32 %v1279_v10, %v1286_v60  ;;  %v1287_v8 = vsel %vm843_vm3, %v1285_v16, %v1286_v60 }
  0x57   : > { %915 = vadd.xlane.f32.xlu0 %v914_v54  ;;  %v1278_v0 = vmax.f32 %v2395_v43, %v1266_v11  ;;  %v1340_v22 = vmax.f32 %v1318_v35, %v1327_v15  ;;  %v1308_v26 = vsel %vm994_vm5, %v1306_v7, %v1307_v29  ;;  %v1330_v27 = vsel %vm1324_vm6, %v1328_v20, %v1329_v62 }
  0x58   : > { %v1281_v14 = vmax.f32 %v2436_v36, %v1268_v59  ;;  %v1356_v28 = vsel %vm1355_vm7, %v1347_v2, 0.0  ;;  %v1321_v30 = vmax.f32 %v1300_v21, %v1307_v29  ;;  %v1289_v5 = vrot.slane %v2436_v36, 2 }
  0x59   : > { %v1299_v1 = vmax.f32 %v1278_v0, %v1287_v8  ;;  %1357 = vadd.xlane.f32.xlu1 %v1356_v28  ;;  %v1346_v6 = vmul.f32 %v2295_v19, %v1340_v22  ;;  %v1310_v43 = vrot.slane %v2436_v36, 3  ;;  %v1332_v13 = vrot.slane %v2436_v36, 4  ;;  %v599_v28 = vld [vmem:[%s2820_s4 + $0x8] sm:$0x7f] }
  0x5a   : > { %v1267_v31 = vrot.slane %v2446_v52, 1  ;;  %v1343_v32 = vmax.f32 %v1321_v30, %v1329_v62  ;;  %v1302_v33 = vmax.f32 %v1281_v14, %v1289_v5  ;;  %v1288_v37 = vrot.slane %v2446_v52, 2  ;;  %v598_v14 = vld [vmem:[%s2820_s4] sm:$0xff] }
  0x5b   : > { %v1320_v34 = vmax.f32 %v1299_v1, %v1308_v26  ;;  %v1352_v38 = vsel %vm531_vm2, %v1346_v6, 0.0  ;;  %v1309_v24 = vrot.slane %v2446_v52, 3  ;;  %v1331_v41 = vrot.slane %v2446_v52, 4 }
  0x5c   : > { %v1269_v39 = vsel %vm452_vm1, %v1267_v31, %v1268_v59  ;;  %1353 = vadd.xlane.f32.xlu0 %v1352_v38  ;;  %v1349_v3 = vmul.f32 %v2295_v19, %v1343_v32  ;;  %v1323_v17 = vmax.f32 %v1302_v33, %v1310_v43  ;;  %v1290_v23 = vsel %vm843_vm3, %v1288_v37, %v1289_v5 }
  0x5d   : > { %v1342_v36 = vmax.f32 %v1320_v34, %v1330_v27  ;;  %v1280_v57 = vmax.f32 %v2446_v52, %v1269_v39  ;;  %v1311_v44 = vsel %vm994_vm5, %v1309_v24, %v1310_v43  ;;  %v1333_v12 = vsel %vm1324_vm6, %v1331_v41, %v1332_v13 }
  0x5e   : > { %v1591_v46 = vrot.slane %v2415_v63, 1  ;;  %v1362_v48 = vsel %vm1355_vm7, %v1349_v3, 0.0  ;;  %v1345_v55 = vmax.f32 %v1323_v17, %v1332_v13  ;;  %v1601_v40 = vrot.slane %v2415_v63, 2 }
  0x5f   : > { %v1348_v49 = vmul.f32 %v2295_v19, %v1342_v36  ;;  %v1301_v53 = vmax.f32 %v1280_v57, %v1290_v23  ;;  %1363 = vadd.xlane.f32.xlu1 %v1362_v48  ;;  %v1602_v52 = vrot.slane %v2401_v47, 2  ;;  %v1611_v54 = vrot.slane %v2415_v63, 3 }
  0x60   : > { %v1595_v51 = vmax.f32 %v2415_v63, %v1591_v46  ;;  %v1351_v45 = vmul.f32 %v2295_v19, %v1345_v55  ;;  %v1612_v15 = vrot.slane %v2401_v47, 3  ;;  %v1621_v60 = vrot.slane %v2415_v63, 4 }
  0x61   : > { %v1359_v56 = vsel %vm531_vm2, %v1348_v49, 0.0  ;;  %v1322_v25 = vmax.f32 %v1301_v53, %v1311_v44  ;;  %v1603_v58 = vsel %vm843_vm3, %v1601_v40, %v1602_v52  ;;  %v1622_v61 = vrot.slane %v2401_v47, 4 }
  0x62   : > { %1360 = vadd.xlane.f32.xlu0 %v1359_v56  ;;  %v1631_v29 = vrot.slane %v2415_v63, 5  ;;  %v1368_v62 = vsel %vm1355_vm7, %v1351_v45, 0.0  ;;  %v1607_v9 = vmax.f32 %v1595_v51, %v1603_v58  ;;  %v1613_v10 = vsel %vm994_vm5, %v1611_v54, %v1612_v15  ;;  %vm2013_vm7 = vmpackc.low %vm994_vm5, %vm2135_vm9 }
  0x63   : > { %v1344_v4 = vmax.f32 %v1322_v25, %v1333_v12  ;;  %1369 = vadd.xlane.f32.xlu1 %v1368_v62  ;;  %v1623_v16 = vsel %vm1324_vm6, %v1621_v60, %v1622_v61  ;;  %v1632_v7 = vrot.slane %v2401_v47, 5  ;;  %v1584_v35 = vmax.f32 %v2392_v42, %v2290_v18 }
  0x64   : > { %v1599_v11 = vrot.slane %v2331_v50, 2  ;;  %v1617_v59 = vmax.f32 %v1607_v9, %v1613_v10  ;;  %v1609_v63 = vrot.slane %v2331_v50, 3  ;;  %v1619_v47 = vrot.slane %v2331_v50, 4 }
  0x65   : > { %v1350_v20 = vmul.f32 %v2295_v19, %v1344_v4  ;;  %v1633_v2 = vsel %vm1417_vm8, %v1631_v29, %v1632_v7  ;;  %v1590_v21 = vrot.slane %v1584_v35, 1  ;;  %v1598_v0 = vrot.slane %v1584_v35, 2 }
  0x66   : > { %v1608_v8 = vrot.slane %v1584_v35, 3  ;;  %v1627_v26 = vmax.f32 %v1617_v59, %v1623_v16  ;;  %v1618_v27 = vrot.slane %v1584_v35, 4  ;;  %v1628_v5 = vrot.slane %v1584_v35, 5 }
  0x67   : > { %v1365_v22 = vsel %vm531_vm2, %v1350_v20, 0.0  ;;  %v1594_v18 = vmax.f32 %v1584_v35, %v1590_v21  ;;  %v1600_v42 = vsel %vm843_vm3, %v1598_v0, %v1599_v11  ;;  %v1629_v6 = vrot.slane %v2331_v50, 5 }
  0x68   : > { %1366 = vadd.xlane.f32.xlu0 %v1365_v22  ;;  %v1637_v30 = vmax.f32 %v1627_v26, %v1633_v2  ;;  %v1610_v1 = vsel %vm994_vm5, %v1608_v8, %v1609_v63  ;;  %v1620_v31 = vsel %vm1324_vm6, %v1618_v27, %v1619_v47  ;;  %v2008_v32 = vpack.c.bf16 %v599_v28, %v598_v14 }
  0x69   : > { %v1606_v43 = vmax.f32 %v1594_v18, %v1600_v42  ;;  %v2134_v33 = vmov 0.0|0.0   ;;  %v1630_v38 = vsel %vm1417_vm8, %v1628_v5, %v1629_v6  ;;  %v2137_v50 = vmov 0.0  }
  0x6a   : > { %v1639_v13 = vmul.f32 %v2295_v19, %v1637_v30  ;;  %2007 = vmatprep.subr.bf16.mxu1 %v2134_v33  ;;  %1965 = vmatprep.mubr.msk.f32.mxu1 %vm2136_vm11, %v2137_v50  ;;  %v616_v57 = vlaneseq  ;;  %v2609_v53 = vstv %s419_s30  ;;  %vm700_vm2 = vcmask 1045509  }
  0x6b   : > { %v1616_v34 = vmax.f32 %v1606_v43, %v1610_v1  ;;  %2010 = vmatpush3.bf16.msk.msra.mxu1 %vm2009_vm10, %v2008_v32  ;;  %vm702_vm3 = vcmask 1046534   ;;  %vm704_vm4 = vcmask 1047559   ;;  %vm706_vm6 = vcmask 121856  }
  0x6c   : > { %v1643_v37 = vsel %vm535_vm0, %v1639_v13, 0.0  ;;  %2011 = vmatprep.subr.bf16.mxu1 %v2134_v33  ;;  %v617_v12 = vand.u32 127, %v616_v57  ;;  %v619_v49 = vshrl.u32 %v616_v57, 7  ;;  %v931_v57 = vld [vmem:[%s2822_s6 + $0x8] sm:$0x1f]  ;;  %vm991_vm10 = vcmask 105472  }
  0x6d   : > { %1644 = vadd.xlane.f32.xlu1 %v1643_v37  ;;  %v1626_v39 = vmax.f32 %v1616_v34, %v1620_v31 }
  0x6e   : > { %v622_v55 = vadd.s32 4294967288, %v617_v12  ;;  %v2611_v40 = vsub.s32 %v617_v12, %v619_v49 }
  0x6f   : > { %v1636_v24 = vmax.f32 %v1626_v39, %v1630_v38 }
  0x70   : > { %v2614_v54 = vsub.s32 %v622_v55, %v619_v49 }
  0x71   : > { %v1638_v41 = vmul.f32 %v2295_v19, %v1636_v24 }
  0x73   : > { %v1640_v3 = vsel %vm535_vm0, %v1638_v41, 0.0  ;;  %vm698_vm0 = vcmask 1044484  }
  0x74   : > { %1641 = vadd.xlane.f32.xlu0 %v1640_v3 }
  0xb2   : > { %v544_v36 = vpop.xlane.xlu1 %543 }
  0xb3   : > { %v538_v17 = vpop.xlane.xlu0 %537  ;;  %v585_v56 = vadd.f32 %v2609_v53, %v544_v36 }
  0xb4   : > { %v583_v45 = vadd.f32 %v2609_v53, %v538_v17  ;;  %v930_v17 = vld [vmem:[%s2822_s6] sm:$0xff] }
  0xb5   : > { %v636_v4 = vrot.slane %v585_v56, %v2614_v54  ;;  %v2012_v55 = vpack.c.bf16 %v931_v57, %v930_v17 }
  0xb6   : > { %v550_v23 = vpop.xlane.xlu1 %549  ;;  %v626_v9 = vrot.slane %v583_v45, %v2614_v54 }
  0xb7   : > { %v534_v44 = vpop.xlane.xlu0 %533  ;;  %v587_v58 = vadd.f32 %v2609_v53, %v550_v23 }
  0xb8   : > { %v582_v19 = vadd.f32 %v2609_v53, %v534_v44 }
  0xb9   : > { %v645_v11 = vrot.slane %v587_v58, %v2614_v54 }
  0xba   : > { %v556_v46 = vpop.xlane.xlu1 %555  ;;  %v621_v60 = vrot.slane %v582_v19, %v2611_v40 }
  0xbb   : > { %v547_v48 = vpop.xlane.xlu0 %546  ;;  %v589_v7 = vadd.f32 %v2609_v53, %v556_v46 }
  0xbc   : > { %v586_v25 = vadd.f32 %v2609_v53, %v547_v48  ;;  %v628_v20 = vsel %vm627_vm12, %v626_v9, %v621_v60 }
  0xbd   : > { %v654_v47 = vrot.slane %v589_v7, %v2614_v54 }
  0xbe   : > { %v562_v51 = vpop.xlane.xlu1 %561  ;;  %v641_v10 = vrot.slane %v586_v25, %v2611_v40 }
  0xbf   : > { %v553_v52 = vpop.xlane.xlu0 %552  ;;  %v591_v27 = vadd.f32 %v2609_v53, %v562_v51 }
  0xc0   : > { %v588_v62 = vadd.f32 %v2609_v53, %v553_v52  ;;  %v646_v26 = vsel %vm627_vm12, %v645_v11, %v641_v10 }
  0xc1   : > { %v663_v13 = vrot.slane %v591_v27, %v2614_v54 }
  0xc2   : > { %v541_v15 = vpop.xlane.xlu1 %540  ;;  %v650_v21 = vrot.slane %v588_v62, %v2611_v40 }
  0xc3   : > { %v584_v61 = vadd.f32 %v2609_v53, %v541_v15  ;;  %v559_v29 = vpop.xlane.xlu0 %558 }
  0xc4   : > { %v590_v63 = vadd.f32 %v2609_v53, %v559_v29  ;;  %v655_v1 = vsel %vm627_vm12, %v654_v47, %v650_v21 }
  0xc5   : > { %v632_v16 = vrot.slane %v584_v61, %v2611_v40 }
  0xc6   : > { %v568_v35 = vpop.xlane.xlu1 %567  ;;  %v659_v14 = vrot.slane %v590_v63, %v2611_v40 }
  0xc7   : > { %v637_v59 = vsel %vm627_vm12, %v636_v4, %v632_v16  ;;  %v565_v2 = vpop.xlane.xlu0 %564  ;;  %v593_v8 = vadd.f32 %v2609_v53, %v568_v35 }
  0xc8   : > { %v693_v0 = vsel %vm692_vm13, %v637_v59, %v628_v20  ;;  %v592_v22 = vadd.f32 %v2609_v53, %v565_v2  ;;  %v664_v38 = vsel %vm627_vm12, %v663_v13, %v659_v14 }
  0xc9   : > { %v695_v18 = vsel %vm694_vm14, %v646_v26, %v693_v0  ;;  %v672_v5 = vrot.slane %v593_v8, %v2614_v54 }
  0xca   : > { %v574_v42 = vpop.xlane.xlu1 %573  ;;  %v668_v6 = vrot.slane %v592_v22, %v2611_v40  ;;  %v697_v31 = vsel %vm696_vm15, %v655_v1, %v695_v18  ;;  %v1377_v18 = vld [vmem:[%s2824_s8] sm:$0xff] }
  0xcb   : > { %v595_v28 = vadd.f32 %v2609_v53, %v574_v42  ;;  %v571_v30 = vpop.xlane.xlu0 %570  ;;  %v699_v41 = vsel %vm698_vm0, %v664_v38, %v697_v31  ;;  %v1378_v42 = vld [vmem:[%s2824_s8 + $0x8] sm:$0x7] }
  0xcc   : > { %v594_v43 = vadd.f32 %v2609_v53, %v571_v30  ;;  %v673_v3 = vsel %vm627_vm12, %v672_v5, %v668_v6  ;;  %v2016_v13 = vpack.c.bf16 %v1378_v42, %v1377_v18 }
  0xcd   : > { %v681_v32 = vrot.slane %v595_v28, %v2614_v54  ;;  %v701_v49 = vsel %vm700_vm2, %v673_v3, %v699_v41  ;;  %vm2017_vm2 = vmpackc.low %vm1417_vm8, %vm2135_vm9  ;;  %vm1414_vm9 = vcmask 89088  }
  0xce   : > { %v677_v34 = vrot.slane %v594_v43, %v2611_v40  ;;  %v580_v37 = vpop.xlane.xlu1 %579 }
  0xcf   : > { %v597_v39 = vadd.f32 %v2609_v53, %v580_v37  ;;  %v577_v24 = vpop.xlane.xlu0 %576 }
  0xd0   : > { %v596_v36 = vadd.f32 %v2609_v53, %v577_v24  ;;  %v682_v23 = vsel %vm627_vm12, %v681_v32, %v677_v34 }
  0xd1   : > { %v690_v44 = vrot.slane %v597_v39, %v2614_v54  ;;  %v703_v19 = vsel %vm702_vm3, %v682_v23, %v701_v49 }
  0xd2   : > { %v686_v12 = vrot.slane %v596_v36, %v2611_v40  ;;  %v895_v46 = vpop.xlane.xlu1 %894 }
  0xd3   : > { %v891_v48 = vpop.xlane.xlu0 %890  ;;  %v921_v62 = vadd.f32 %v895_v46, %v2609_v53 }
  0xd4   : > { %v691_v51 = vsel %vm627_vm12, %v690_v44, %v686_v12  ;;  %v920_v4 = vadd.f32 %v891_v48, %v2609_v53 }
  0xd5   : > { %v705_v52 = vsel %vm704_vm4, %v691_v51, %v703_v19  ;;  %v949_v59 = vrot.slane %v921_v62, %v2614_v54 }
  0xd6   : > { %1966 = vmatmul.mubr.msk.f32.vlgmr.msra.gmra.mrb[0].mxu1 %vm706_vm6, %v705_v52  ;;  %v901_v56 = vpop.xlane.xlu1 %900  ;;  %v945_v63 = vrot.slane %v920_v4, %v2611_v40 }
  0xd7   : > { %v898_v45 = vpop.xlane.xlu0 %897  ;;  %2014 = vmatpush3.bf16.msk.msra.mxu1 %vm2013_vm7, %v2012_v55  ;;  %1972 = vmatprep.mubr.msk.f32.mxu1 %vm2136_vm11, %v2137_v50  ;;  %v923_v15 = vadd.f32 %v901_v56, %v2609_v53 }
  0xd8   : > { %2015 = vmatprep.subr.bf16.mxu1 %v2134_v33  ;;  %v922_v58 = vadd.f32 %v898_v45, %v2609_v53  ;;  %v950_v14 = vsel %vm627_vm12, %v949_v59, %v945_v63  ;;  %v1736_v63 = vld [vmem:[%s2825_s9] sm:$0xff] }
  0xd9   : > { %v958_v10 = vrot.slane %v923_v15, %v2614_v54 }
  0xda   : > { %v907_v25 = vpop.xlane.xlu1 %906  ;;  %v954_v16 = vrot.slane %v922_v58, %v2611_v40 }
  0xdb   : > { %v904_v60 = vpop.xlane.xlu0 %903  ;;  %v925_v61 = vadd.f32 %v907_v25, %v2609_v53  ;;  %v1648_v25 = vld [vmem:[%s2826_s10] sm:$0x7f] }
  0xdc   : > { %v924_v29 = vadd.f32 %v904_v60, %v2609_v53  ;;  %v959_v8 = vsel %vm627_vm12, %v958_v10, %v954_v16 }
  0xdd   : > { %v967_v35 = vrot.slane %v925_v61, %v2614_v54  ;;  %v987_v1 = vsel %vm692_vm13, %v959_v8, %v950_v14 }
  0xde   : > { %v913_v9 = vpop.xlane.xlu1 %912  ;;  %v963_v11 = vrot.slane %v924_v29, %v2611_v40 }
  0xdf   : > { %v927_v33 = vadd.f32 %v913_v9, %v2609_v53  ;;  %v1068_v9 = vld [vmem:[%s2821_s5] sm:$0xff] }
  0xe0   : > { %v910_v7 = vpop.xlane.xlu0 %909  ;;  %v968_v27 = vsel %vm627_vm12, %v967_v35, %v963_v11  ;;  %v1491_v35 = vld [vmem:[%s2823_s7] sm:$0xff] }
  0xe1   : > { %v926_v20 = vadd.f32 %v910_v7, %v2609_v53  ;;  %v976_v2 = vrot.slane %v927_v33, %v2614_v54  ;;  %v988_v43 = vsel %vm694_vm14, %v968_v27, %v987_v1  ;;  %v1069_v33 = vld [vmem:[%s2821_s5 + $0x8] sm:$0xff] }
  0xe2   : > { %v919_v0 = vpop.xlane.xlu1 %918  ;;  %v783_v7 = vld [vmem:[%s2819_s3 + $0x8] sm:$0xff] }
  0xe3   : > { %v972_v21 = vrot.slane %v926_v20, %v2611_v40  ;;  %v929_v22 = vadd.f32 %v919_v0, %v2609_v53  ;;  %v1492_v20 = vld [vmem:[%s2823_s7 + $0x8] sm:$0xff] }
  0xe4   : > { %v916_v26 = vpop.xlane.xlu0 %915 }
  0xe5   : > { %v928_v47 = vadd.f32 %v916_v26, %v2609_v53  ;;  %v977_v28 = vsel %vm627_vm12, %v976_v2, %v972_v21  ;;  %v985_v30 = vrot.slane %v929_v22, %v2614_v54  ;;  %v1737_v21 = vld [vmem:[%s2825_s9 + $0x8] sm:$0xff] }
  0xe6   : > { %v1358_v6 = vpop.xlane.xlu1 %1357  ;;  %v989_v32 = vsel %vm696_vm15, %v977_v28, %v988_v43 }
  0xe7   : > { %v981_v5 = vrot.slane %v928_v47, %v2611_v40  ;;  %v1372_v39 = vadd.f32 %v1358_v6, %v2609_v53 }
  0xe9   : > { %v986_v31 = vsel %vm627_vm12, %v985_v30, %v981_v5  ;;  %v1354_v34 = vpop.xlane.xlu0 %1353  ;;  %v1392_v23 = vrot.slane %v1372_v39, %v2614_v54 }
  0xea   : > { %v990_v37 = vsel %vm698_vm0, %v986_v31, %v989_v32  ;;  %v1371_v24 = vadd.f32 %v1354_v34, %v2609_v53 }
  0xeb   : > { %1973 = vmatmul.mubr.msk.f32.vlgmr.msra.gmra.mrb[2].mxu1 %vm991_vm10, %v990_v37 }
  0xec   : > { %2018 = vmatpush3.bf16.msk.msra.mxu1 %vm2017_vm2, %v2016_v13  ;;  %1989 = vmatprep.mubr.msk.f32.mxu1 %vm2136_vm11, %v2137_v50  ;;  %v1364_v38 = vpop.xlane.xlu1 %1363  ;;  %v1388_v44 = vrot.slane %v1371_v24, %v2611_v40 }
  0xed   : > { %1997 = vmatprep.subr.mxu1 %v2137_v50  ;;  %v1374_v41 = vadd.f32 %v1364_v38, %v2609_v53 }
  0xee   : > { %v1393_v51 = vsel %vm627_vm12, %v1392_v23, %v1388_v44 }
  0xef   : > { %v1361_v3 = vpop.xlane.xlu0 %1360  ;;  %v1401_v12 = vrot.slane %v1374_v41, %v2614_v54 }
  0xf0   : > { %v1373_v36 = vadd.f32 %v1361_v3, %v2609_v53  ;;  %v1370_v17 = vpop.xlane.xlu1 %1369 }
  0xf1   : > { %v1376_v57 = vadd.f32 %v1370_v17, %v2609_v53 }
  0xf2   : > { %v1397_v46 = vrot.slane %v1373_v36, %v2611_v40 }
  0xf3   : > { %v1410_v49 = vrot.slane %v1376_v57, %v2614_v54 }
  0xf4   : > { %v1402_v19 = vsel %vm627_vm12, %v1401_v12, %v1397_v46 }
  0xf5   : > { %v1367_v48 = vpop.xlane.xlu0 %1366  ;;  %v1412_v45 = vsel %vm692_vm13, %v1402_v19, %v1393_v51 }
  0xf6   : > { %v1375_v55 = vadd.f32 %v1367_v48, %v2609_v53 }
  0xf8   : > { %v1406_v52 = vrot.slane %v1375_v55, %v2611_v40 }
  0xfa   : > { %v1411_v56 = vsel %vm627_vm12, %v1410_v49, %v1406_v52  ;;  %v1645_v54 = vpop.xlane.xlu1 %1644  ;;  %vm1660_vm12 = vcmask 56320  }
  0xfb   : > { %v1413_v15 = vsel %vm694_vm14, %v1411_v56, %v1412_v45  ;;  %v1647_v58 = vadd.f32 %v1645_v54, %v2609_v53  ;;  %vm1745_vm14 = vcmask 1041408  }
  0xfc   : > { %1990 = vmatmul.mubr.msk.f32.vlgmr.msra.gmra.mrb[4].mxu1 %vm1414_vm9, %v1413_v15 }
  0xfd   : > { %1998 = vmatpush3.msk.msra.mxu1 %vm452_vm1, %v1648_v25  ;;  %1999 = vmatprep.mubr.msk.f32.mxu1 %vm2136_vm11, %v2137_v50  ;;  %v1658_v61 = vrot.slane %v1647_v58, %v2611_v40  ;;  %vm1070_vm1 = vcmask 39936   ;;  %vm1155_vm11 = vcmask 64512  }
  0xfe   : > { %1977 = vmatprep.mubr.msk.f32.mxu0 %vm1070_vm1, %v1068_v9 }
 0x101   : > { %v1642_v60 = vpop.xlane.xlu0 %1641 }
 0x102   : > { %v1646_v29 = vadd.f32 %v1642_v60, %v2609_v53 }
 0x104   : > { %v1654_v62 = vrot.slane %v1646_v29, %v2611_v40  ;;  %v782_v40 = vld [vmem:[%s2819_s3] sm:$0xff] }
 0x106   : > { %v1659_v4 = vsel %vm692_vm13, %v1658_v61, %v1654_v62  ;;  %vm1493_vm13 = vcmask 23552  }
 0x107   : > { %2000 = vmatmul.mubr.msk.f32.vlgmr.msra.gmra.mrb[6].mxu1 %vm1660_vm12, %v1659_v4 }
 0x1a9   : > { %v778_v50 = vpop.f32.mrb[0].mxu1 }
 0x1aa   : > { %v1967_v10 = vpop.f32.mrb[1].mxu1 }
 0x1be   : > { %v1064_v16 = vpop.f32.mrb[2].mxu1 }
 0x1bf   : > { %v1974_v53 = vpop.f32.mrb[3].mxu1  ;;  %1975 = vmatprep.subr.msk.mxu0 %vm994_vm5, %v1064_v16 }
 0x1c0   : > { %1976 = vmatpush3.msk.msra.mxu0 %vm994_vm5, %v1064_v16  ;;  %vm1738_vm5 = vcmask 15360  }
 0x1c1   : > { %1978 = vmatmul.mubr.msk.f32.vlgmr.msra.gmra.mrb[0].mxu0 %vm1070_vm1, %v1069_v33  ;;  %1980 = vmatprep.subr.mxu0 %v778_v50 }
 0x1c2   : > { %1981 = vmatpush3.msra.mxu0 %v778_v50  ;;  %1982 = vmatprep.mubr.msk.f32.mxu0 %vm1155_vm11, %v782_v40 }
 0x1c9   : > { %1983 = vmatmul.mubr.msk.f32.vlgmr.msra.gmra.mrb[0].mxu0 %vm1155_vm11, %v783_v7 }
 0x1ca   : > { %1994 = vmatprep.mubr.msk.f32.mxu0 %vm1493_vm13, %v1491_v35 }
 0x1cf   : > { %v1487_v11 = vpop.f32.mrb[4].mxu1 }
 0x1d0   : > { %v1991_v59 = vpop.f32.mrb[5].mxu1  ;;  %1992 = vmatprep.subr.msk.mxu0 %vm1417_vm8, %v1487_v11 }
 0x1d1   : > { %1993 = vmatpush3.msk.msra.mxu0 %vm1417_vm8, %v1487_v11 }
 0x1d2   : > { %1995 = vmatmul.mubr.msk.f32.vlgmr.msra.gmra.mrb[0].mxu0 %vm1493_vm13, %v1492_v20 }
 0x1d3   : > { %2004 = vmatprep.mubr.msk.f32.mxu0 %vm1738_vm5, %v1736_v63 }
 0x1da   : > { %v1732_v2 = vpop.f32.mrb[6].mxu1 }
 0x1db   : > { %v2001_v0 = vpop.f32.mrb[7].mxu1  ;;  %2002 = vmatprep.subr.msk.mxu0 %vm1745_vm14, %v1732_v2 }
 0x1dc   : > { %2003 = vmatpush3.msk.msra.mxu0 %vm1745_vm14, %v1732_v2 }
 0x1dd   : > { %2005 = vmatmul.mubr.msk.f32.vlgmr.msra.gmra.mrb[0].mxu0 %vm1738_vm5, %v1737_v21 }
 0x2b0   : > { %v2006_v8 = vpop.f32.mrb[0].mxu0 }
 0x2b1   : > { %1827 = vst [vmem:[%s380_s18 + $0x8] sm:$0xff] %v2006_v8  ;;  %v1815_v22 = vpop.f32.mrb[1].mxu0 }
 0x2b2   : > { %1826 = vst [vmem:[%s380_s18] sm:$0xff] %v1815_v22 }
 0x2b3   : > { %2083 = shalt.err (!%p2080_p3)
}
 0x2b4   : > { %s2084_s16 = scalar_lea.hbm %s2773_s12, 256  ;;  %s2088_s26 = scalar_lea.hbm %s2827_s11, 512 }
 0x2b5   : > { %p2085_p4 = scmp.ne.s32.totalorder %s2773_s12, %s2084_s16  ;;  %p2089_p9 = scmp.lt.u32.totalorder %s2773_s12, %s2827_s11 }
 0x2b6   : > { %p2090_p10 = scmp.lt.u32.totalorder %s2088_s26, %s2084_s16  ;;  %p2092_p12 = scmp.lt.u32.totalorder %s2084_s16, %s2773_s12 }
 0x2b7   : > { %p2086_p7 = pnand %p2085_p4, %p2242_p5 }
 0x2b8   : > { %p2091_p11 = por %p2090_p10, %p2089_p9 }
 0x2b9   : > { %p2087_p8 = pneg %p2086_p7 }
 0x2ba   : > { %p2093_p13 = por %p2092_p12, %p2091_p11 }
 0x2bc   : > { %p2094_p0 = pnand %p2093_p13, %p2087_p8 }
 0x2be   : > { %2097 = shalt.err (!%p2094_p0)
}
 0x2bf   : > { %s2139_s14 = smov 128   ;;  %s2140_s15 = smov 8  }
 0x2c0   : > { %2025 = dma.vmem_to_hbm [thread:$0]  (%p2242_p5), %s2768_s23, 256, %s2773_s12, %s2775_s13, %s2139_s14, %s2139_s14, %s2140_s15  }
 0x2c1 PF: > { %p2031_p1 = scmp.ge.s32.totalorder %s2132_s22, 2  ;;  %s1857_s17 = sand.u32 1, %s2120_s19  }
 0x2c2   : > { %s1858_s16 = scalar_lea.sflag [#allocation4], %s1857_s17 }
 0x2c3   : > { %p2028_p2 = pnand %p2031_p1, %p2246_p6 }
 0x2c5   : > { %2115 = dma.done.wait (!%p2028_p2), %s1858_s16, 256  }
 0x2c6   : > { %2117 = vsyncadd (!%p2028_p2), %s1858_s16, 4294967040  ;;  %p22_p3 = scmp.ge.s32.totalorder %s2229_s24, 4   ;;  %s2830_s19 = smov %s2124_s20 }
 0x2c7   : > { %s2831_s20 = smov %s2128_s21  ;;  %s2832_s21 = smov %s2240_s27 }
 0x2c8   : > { %s2833_s22 = smov %s2229_s24  ;;  %24 = sbr.rel (!%p22_p3) target bundleno = 5 (0x5), region = 99 }
 0x2cf   :  { %1863 = vsyncpa [#allocation4], 1 }
 0x2d0   :  { %1865 = vsyncpa [#allocation4 + $0x1], 1 }

</bundles_post_ra>
